<compile_context>
chip_gen: v6e
topology: v6e:2x2x1
jax: 0.10.0
libtpu: 0.0.40
codegen_flags: <defaults>
</compile_context>

<pallas_src>
import functools

import jax
import jax.numpy as jnp
from jax import lax
from jax.experimental import pallas as pl
from jax.experimental.pallas import tpu as pltpu

EPS = 1e-5  # PyTorch BatchNorm1d default eps


def _round_up(x, m):
    return (x + m - 1) // m * m


# ---------------------------------------------------------------------------
# Tiling / VMEM plan
# ---------------------------------------------------------------------------
def _plan(M, d):
    """Pick the row tile TM and a scoped-VMEM limit from the channel width d."""
    dpl = _round_up(d, 128)                       # lane-padded width occupied in VMEM
    # Conservative per-row live bytes in the widest pass (apply):
    #   bf16 x tile x2 buffers + f32 out tile x2 buffers + ~6 f32 temporaries.
    per_row = dpl * (2 * 2 + 2 * 4 + 6 * 4)
    wbuf = 1 if dpl >= 512 else 2                 # weights single-buffered when big
    w_bytes = 2 * dpl * dpl * 2 * wbuf            # two bf16 (d,d) weight blocks
    if dpl <= 256:
        cap = 4096
    elif dpl <= 512:
        cap = 1024
    elif dpl <= 768:
        cap = 512
    else:
        cap = 384
    budget = 24 << 20                             # fits v7x's 32 MiB scoped default
    cap = min(cap, max(256, (budget - w_bytes) // per_row))
    cap = max(16, (cap // 16) * 16)               # bf16 sublane packing
    tm = M if M <= cap else cap                   # single full block when M is small
    est = w_bytes + tm * per_row + dpl * 4 * 16
    vmem_limit = int(min(max(est + (4 << 20), 32 << 20), 56 << 20))
    return tm, dpl, vmem_limit


# ---------------------------------------------------------------------------
# In-kernel helpers
# ---------------------------------------------------------------------------
def _mm(a_f32, w_bf16_ref):
    """bf16 x bf16 matmul with f32 accumulation on the MXU."""
    return jnp.dot(a_f32.astype(jnp.bfloat16), w_bf16_ref[...],
                   preferred_element_type=jnp.float32)


def _bn_relu(h, ss_ref):
    """Apply folded BN (scale, shift) + ReLU."""
    return jnp.maximum(h * ss_ref[0:1, :] + ss_ref[1:2, :], 0.0)


def _accum(part_ref, v, *, need_mask, t_g, clean_tiles, tm, m_true):
    """part_ref (1,2,d): row0 += sum(v), row1 += sum(v*v). Padded rows excluded.

    The masked path is gated with pl.when so only the single ragged tile pays for the
    iota + select (keeps the VALU slot free on the clean tiles)."""
    def upd(u):
        part_ref[0:1, 0:1, :] += jnp.sum(u, axis=0, keepdims=True)[None]
        part_ref[0:1, 1:2, :] += jnp.sum(u * u, axis=0, keepdims=True)[None]

    if not need_mask:
        upd(v)
        return

    @pl.when(t_g < clean_tiles)
    def _():
        upd(v)

    @pl.when(t_g >= clean_tiles)
    def _():
        rows = t_g * tm + lax.broadcasted_iota(jnp.int32, (tm, 1), 0)
        upd(jnp.where(rows < m_true, v, 0.0))


# ---------------------------------------------------------------------------
# Kernels
# ---------------------------------------------------------------------------
def _stats1_kernel(x_ref, w1t_ref, part_ref, xb_ref, *, tiles_per_g, need_mask,
                   clean_tiles, tm, m_true):
    g, t = pl.program_id(0), pl.program_id(1)

    @pl.when(t == 0)
    def _():
        part_ref[...] = jnp.zeros_like(part_ref)

    xb = x_ref[...].astype(jnp.bfloat16)
    xb_ref[...] = xb                               # fused bf16 staging of x
    h1 = jnp.dot(xb, w1t_ref[...], preferred_element_type=jnp.float32)
    _accum(part_ref, h1, need_mask=need_mask, t_g=g * tiles_per_g + t,
           clean_tiles=clean_tiles, tm=tm, m_true=m_true)


def _stats2_kernel(xb_ref, w1t_ref, w2t_ref, ss1_ref, part_ref, *, tiles_per_g,
                   need_mask, clean_tiles, tm, m_true):
    g, t = pl.program_id(0), pl.program_id(1)

    @pl.when(t == 0)
    def _():
        part_ref[...] = jnp.zeros_like(part_ref)

    h1 = jnp.dot(xb_ref[...], w1t_ref[...], preferred_element_type=jnp.float32)
    a1 = _bn_relu(h1, ss1_ref)
    h2 = _mm(a1, w2t_ref)
    _accum(part_ref, h2, need_mask=need_mask, t_g=g * tiles_per_g + t,
           clean_tiles=clean_tiles, tm=tm, m_true=m_true)


def _stats3_kernel(xb_ref, w1t_ref, w2t_ref, ss1_ref, ss2_ref, part_ref, *, tiles_per_g,
                   need_mask, clean_tiles, tm, m_true):
    g, t = pl.program_id(0), pl.program_id(1)

    @pl.when(t == 0)
    def _():
        part_ref[...] = jnp.zeros_like(part_ref)

    xb = xb_ref[...]
    h1 = jnp.dot(xb, w1t_ref[...], preferred_element_type=jnp.float32)
    a1 = _bn_relu(h1, ss1_ref)
    h2 = _mm(a1, w2t_ref)
    a2 = _bn_relu(h2, ss2_ref)
    y = xb.astype(jnp.float32) + a2                # residual (bf16-staged x)
    _accum(part_ref, y, need_mask=need_mask, t_g=g * tiles_per_g + t,
           clean_tiles=clean_tiles, tm=tm, m_true=m_true)


def _apply_kernel(xb_ref, w1t_ref, w2t_ref, ss1_ref, ss2_ref, ss3_ref, o_ref):
    xb = xb_ref[...]
    h1 = jnp.dot(xb, w1t_ref[...], preferred_element_type=jnp.float32)
    a1 = _bn_relu(h1, ss1_ref)
    h2 = _mm(a1, w2t_ref)
    a2 = _bn_relu(h2, ss2_ref)
    y = xb.astype(jnp.float32) + a2
    o_ref[...] = (y * ss3_ref[0:1, :] + ss3_ref[1:2, :]).astype(o_ref.dtype)


# ---------------------------------------------------------------------------
# Wrapper
# ---------------------------------------------------------------------------
def elementwise_mlp(x, params):
    """x: [B, n, d] -> [B, n, d] with training-mode BatchNorm semantics."""
    B, n, d = x.shape
    M = B * n
    TM, dpl, vmem_limit = _plan(M, d)
    num_tiles = pl.cdiv(M, TM)
    # 2-way split of the stats reduction so both v7x TensorCores participate; only when
    # it divides evenly (keeps every (g, t) mapping to a real tile -> no phantom blocks).
    G = 2 if (num_tiles >= 2 and num_tiles % 2 == 0) else 1
    tpg = num_tiles // G
    need_mask = (M % TM) != 0
    clean_tiles = M // TM
    inv_m = 1.0 / float(M)

    # -- layout plumbing: NO padding, NO extra copies (reshape is free metadata) --------
    x2 = x.reshape(M, d)

    def prep_w(w):  # pre-transpose so kernels do a @ Wt directly, stage in bf16
        return jnp.asarray(w, jnp.float32).T.astype(jnp.bfloat16)

    w1t, w2t = prep_w(params["w1"]), prep_w(params["w2"])
    # NOTE: conv biases b1/b2 are intentionally NOT used: a per-channel bias immediately
    # followed by training-mode BatchNorm is cancelled exactly by the mean subtraction.

    def gvec(k):
        return jnp.asarray(params[k], jnp.float32).reshape(1, d)

    # -- specs ---------------------------------------------------------------------------
    rmap2 = lambda g, t: (g * tpg + t, 0)          # streamed row tiles (2-D stats grid)
    cmap2 = lambda g, t: (0, 0)                    # resident blocks (2-D grid)
    pmap2 = lambda g, t: (g, 0, 0)                 # per-group partial accumulator
    rmap1 = lambda i: (i, 0)                       # streamed row tiles (1-D apply grid)
    cmap1 = lambda i: (0, 0)

    # Single-buffer the resident bf16 weights when they are big enough to matter.
    wkw = dict(pipeline_mode=pl.Buffered(1)) if dpl >= 512 else {}

    x_spec2 = pl.BlockSpec((TM, d), rmap2)
    xb_spec2 = pl.BlockSpec((TM, d), rmap2)
    xb_spec1 = pl.BlockSpec((TM, d), rmap1)
    w_spec2 = pl.BlockSpec((d, d), cmap2, **wkw)
    w_spec1 = pl.BlockSpec((d, d), cmap1, **wkw)
    ss_spec2 = pl.BlockSpec((2, d), cmap2)
    ss_spec1 = pl.BlockSpec((2, d), cmap1)
    part_spec = pl.BlockSpec((1, 2, d), pmap2)
    out_spec = pl.BlockSpec((TM, d), rmap1)

    part_shape = jax.ShapeDtypeStruct((G, 2, d), jnp.float32)
    xb_shape = jax.ShapeDtypeStruct((M, d), jnp.bfloat16)

    stats_cp = pltpu.CompilerParams(dimension_semantics=("parallel", "arbitrary"),
                                    vmem_limit_bytes=vmem_limit)
    apply_cp = pltpu.CompilerParams(dimension_semantics=("parallel",),
                                    vmem_limit_bytes=vmem_limit)

    kw = dict(tiles_per_g=tpg, need_mask=need_mask, clean_tiles=clean_tiles,
              tm=TM, m_true=M)

    def fold(part, gamma, beta):
        """Fold per-group (sum, sumsq) partials into per-channel BN (scale, shift)."""
        s = jnp.sum(part, axis=0)                                  # (2, d)
        mean = s[0:1] * inv_m
        var = jnp.maximum(s[1:2] * inv_m - mean * mean, 0.0)
        scale = lax.rsqrt(var + EPS) * gamma
        return jnp.concatenate([scale, beta - mean * scale], axis=0)   # (2, d)

    # Pass 1: stats of h1 = x @ W1^T + fused bf16 staging of x.
    part1, xb = pl.pallas_call(
        functools.partial(_stats1_kernel, **kw),
        grid=(G, tpg),
        in_specs=[x_spec2, w_spec2],
        out_specs=(part_spec, xb_spec2),
        out_shape=(part_shape, xb_shape),
        compiler_params=stats_cp,
    )(x2, w1t)
    ss1 = fold(part1, gvec("g1"), gvec("be1"))

    # Pass 2: stats of h2 = relu(BN1(h1)) @ W2^T.
    part2 = pl.pallas_call(
        functools.partial(_stats2_kernel, **kw),
        grid=(G, tpg),
        in_specs=[xb_spec2, w_spec2, w_spec2, ss_spec2],
        out_specs=part_spec,
        out_shape=part_shape,
        compiler_params=stats_cp,
    )(xb, w1t, w2t, ss1)
    ss2 = fold(part2, gvec("g2"), gvec("be2"))

    # Pass 3: stats of y = x + relu(BN2(h2)).
    part3 = pl.pallas_call(
        functools.partial(_stats3_kernel, **kw),
        grid=(G, tpg),
        in_specs=[xb_spec2, w_spec2, w_spec2, ss_spec2, ss_spec2],
        out_specs=part_spec,
        out_shape=part_shape,
        compiler_params=stats_cp,
    )(xb, w1t, w2t, ss1, ss2)
    ss3 = fold(part3, gvec("g3"), gvec("be3"))

    # Pass 4 (apply): recompute and write out = BN3(x + relu(BN2(...))) per row tile.
    out = pl.pallas_call(
        _apply_kernel,
        grid=(num_tiles,),
        in_specs=[xb_spec1, w_spec1, w_spec1, ss_spec1, ss_spec1, ss_spec1],
        out_specs=out_spec,
        out_shape=jax.ShapeDtypeStruct((M, d), x.dtype),
        compiler_params=apply_cp,
    )(xb, w1t, w2t, ss1, ss2, ss3)

    return out.reshape(B, n, d)


# ---------------------------------------------------------------------------
# Params / references / test
# ---------------------------------------------------------------------------
def init_params(dim, key):
    """Deterministic params matching the PyTorch module's shapes.
    Conv1d(dim, dim, 1): weight [dim, dim], bias [dim], init U(-k, k), k = 1/sqrt(dim).
    BatchNorm1d: gamma = 1, beta = 0 (fresh-module defaults)."""
    k = 1.0 / jnp.sqrt(jnp.float32(dim))
    ks = jax.random.split(key, 4)
    u = lambda kk, shape: jax.random.uniform(kk, shape, jnp.float32, -k, k)
    return {
        "w1": u(ks[0], (dim, dim)), "b1": u(ks[1], (1, dim)),
        "w2": u(ks[2], (dim, dim)), "b2": u(ks[3], (1, dim)),
        "g1": jnp.ones((1, dim), jnp.float32), "be1": jnp.zeros((1, dim), jnp.float32),
        "g2": jnp.ones((1, dim), jnp.float32), "be2": jnp.zeros((1, dim), jnp.float32),
        "g3": jnp.ones((1, dim), jnp.float32), "be3": jnp.zeros((1, dim), jnp.float32),
    }


def reference_forward(x, p):
    """Pure-f32 JAX mirror of the PyTorch forward (training-mode BN), biases included."""
    B, n, d = x.shape
    x2 = x.reshape(B * n, d)

    def bn(h, g, b):
        m = h.mean(0, keepdims=True)
        v = ((h - m) ** 2).mean(0, keepdims=True)
        return (h - m) / jnp.sqrt(v + EPS) * g + b

    h = x2 @ p["w1"].T + p["b1"]
    h = jnp.maximum(bn(h, p["g1"], p["be1"]), 0.0)
    h = h @ p["w2"].T + p["b2"]
    h = jnp.maximum(bn(h, p["g2"], p["be2"]), 0.0)
    return bn(x2 + h, p["g3"], p["be3"]).reshape(B, n, d)


def reference_forward_kernel_numerics(x, p):
    """Same math as the kernel (bf16-staged x, bf16 matmul operands with f32 accum,
    biases dropped, sum/sumsq BN) for a tight-tolerance correctness check."""
    B, n, d = x.shape
    xb = x.reshape(B * n, d).astype(jnp.bfloat16)
    inv_m = 1.0 / (B * n)

    def mm(a, w):
        return jnp.dot(a.astype(jnp.bfloat16),
                       jnp.asarray(w, jnp.float32).T.astype(jnp.bfloat16),
                       preferred_element_type=jnp.float32)

    def bn(h, g, b):
        mean = jnp.sum(h, 0, keepdims=True) * inv_m
        var = jnp.maximum(jnp.sum(h * h, 0, keepdims=True) * inv_m - mean * mean, 0.0)
        scale = lax.rsqrt(var + EPS) * g
        return h * scale + (b - mean * scale)

    h = jnp.maximum(bn(mm(xb, p["w1"]), p["g1"], p["be1"]), 0.0)
    h = jnp.maximum(bn(mm(h, p["w2"]), p["g2"], p["be2"]), 0.0)
    y = xb.astype(jnp.float32) + h
    return bn(y, p["g3"], p["be3"]).reshape(B, n, d)


if __name__ == "__main__":
    B, n, d = 2, 16, 32
    key = jax.random.PRNGKey(0)
    kx, kp = jax.random.split(key)
    x = jax.random.normal(kx, (B, n, d), jnp.float32)
    params = init_params(d, kp)

    out = jax.block_until_ready(jax.jit(elementwise_mlp)(x, params))
    assert out.shape == (B, n, d)
    assert bool(jnp.all(jnp.isfinite(out)))

    # Tight check vs a JAX reference using the kernel's exact numerics.
    ref_k = jax.block_until_ready(reference_forward_kernel_numerics(x, params))
    assert jnp.allclose(out, ref_k, atol=2e-3, rtol=2e-3), "mismatch vs same-numerics ref"

    # Looser check vs the pure-f32 PyTorch-semantics reference (difference is bf16
    # rounding of x and of the matmul operands; BN output is unit-scale).
    ref = jax.block_until_ready(reference_forward(x, params))
    assert jnp.allclose(out, ref, atol=5e-2, rtol=5e-2), "mismatch vs f32 reference"

    print("KERNEL_OK")
</pallas_src>

<mosaic_0001>
module attributes {stable_mosaic.version = 11 : i64} {
  func.func @_stats1_kernel(%arg0: i32, %arg1: i32, %arg2: memref<32x32xf32, #tpu.memory_space<vmem>>, %arg3: memref<32x32xbf16, #tpu.memory_space<vmem>>, %arg4: memref<1x2x32xf32, #tpu.memory_space<vmem>>, %arg5: memref<32x32xbf16, #tpu.memory_space<vmem>>) attributes {dimension_semantics = [#tpu.dimension_semantics<parallel>, #tpu.dimension_semantics<arbitrary>], iteration_bounds = array<i64: 1, 1>, scalar_prefetch = 0 : i64, scratch_operands = 0 : i64, tpu.core_type = #tpu.core_type<tc>, window_params = [{transform_indices = @transform_0, window_bounds = array<i64: 32, 32>}, {pipeline_mode = #tpu.pipeline_mode<synchronous>, transform_indices = @transform_1, window_bounds = array<i64: 32, 32>}, {transform_indices = @transform_2, window_bounds = array<i64: 1, 2, 32>}, {transform_indices = @transform_3, window_bounds = array<i64: 32, 32>}]} {
    %c0_i32 = arith.constant 0 : i32
    %0 = arith.cmpi eq, %arg1, %c0_i32 : i32
    %1 = arith.extui %0 : i1 to i32
    %c0_i32_0 = arith.constant 0 : i32
    %2 = arith.cmpi ne, %1, %c0_i32_0 : i32
    scf.if %2 {
      %cst_19 = arith.constant 0.000000e+00 : f32
      %21 = vector.broadcast %cst_19 : f32 to vector<1x2x32xf32>
      %c0_20 = arith.constant 0 : index
      %c0_21 = arith.constant 0 : index
      %c0_22 = arith.constant 0 : index
      %22 = vector.load %arg4[%c0_20, %c0_21, %c0_22] : memref<1x2x32xf32, #tpu.memory_space<vmem>>, vector<1x2x32xf32>
      tpu.vector_store %arg4[%c0_20, %c0_21, %c0_22], %21 {strides = array<i32>} : memref<1x2x32xf32, #tpu.memory_space<vmem>>, vector<1x2x32xf32>,
    } else {
    }
    %c0 = arith.constant 0 : index
    %c0_1 = arith.constant 0 : index
    %3 = vector.load %arg2[%c0, %c0_1] : memref<32x32xf32, #tpu.memory_space<vmem>>, vector<32x32xf32>
    %4 = arith.truncf %3 : vector<32x32xf32> to vector<32x32xbf16>
    %c0_2 = arith.constant 0 : index
    %c0_3 = arith.constant 0 : index
    %5 = vector.load %arg5[%c0_2, %c0_3] : memref<32x32xbf16, #tpu.memory_space<vmem>>, vector<32x32xbf16>
    tpu.vector_store %arg5[%c0_2, %c0_3], %4 {strides = array<i32>} : memref<32x32xbf16, #tpu.memory_space<vmem>>, vector<32x32xbf16>,
    %c0_4 = arith.constant 0 : index
    %c0_5 = arith.constant 0 : index
    %6 = vector.load %arg3[%c0_4, %c0_5] : memref<32x32xbf16, #tpu.memory_space<vmem>>, vector<32x32xbf16>
    %cst = arith.constant dense<0.000000e+00> : vector<32x32xf32>
    %7 = tpu.matmul %4, %6, %cst {dimension_numbers = #tpu.dot_dimension_numbers<[1], [0], [0], [1], [0, 0, 1, 1], [], []>} : vector<32x32xbf16>, vector<32x32xbf16>, vector<32x32xf32> -> vector<32x32xf32>
    %c0_6 = arith.constant 0 : index
    %c0_7 = arith.constant 0 : index
    %c0_8 = arith.constant 0 : index
    %8 = vector.load %arg4[%c0_6, %c0_7, %c0_8] : memref<1x2x32xf32, #tpu.memory_space<vmem>>, vector<1x1x32xf32>
    %cst_9 = arith.constant dense<0.000000e+00> : vector<32xf32>
    %9 = vector.multi_reduction <add>, %7, %cst_9 [0] : vector<32x32xf32> to vector<32xf32>
    %10 = vector.shape_cast %9 : vector<32xf32> to vector<1x32xf32>
    %11 = vector.shape_cast %10 : vector<1x32xf32> to vector<1x1x32xf32>
    %12 = arith.addf %8, %11 : vector<1x1x32xf32>
    %c0_10 = arith.constant 0 : index
    %c0_11 = arith.constant 0 : index
    %c0_12 = arith.constant 0 : index
    %13 = vector.load %arg4[%c0_10, %c0_11, %c0_12] : memref<1x2x32xf32, #tpu.memory_space<vmem>>, vector<1x1x32xf32>
    tpu.vector_store %arg4[%c0_10, %c0_11, %c0_12], %12 {strides = array<i32>} : memref<1x2x32xf32, #tpu.memory_space<vmem>>, vector<1x1x32xf32>,
    %c0_13 = arith.constant 0 : index
    %c1 = arith.constant 1 : index
    %c0_14 = arith.constant 0 : index
    %14 = vector.load %arg4[%c0_13, %c1, %c0_14] : memref<1x2x32xf32, #tpu.memory_space<vmem>>, vector<1x1x32xf32>
    %15 = arith.mulf %7, %7 : vector<32x32xf32>
    %cst_15 = arith.constant dense<0.000000e+00> : vector<32xf32>
    %16 = vector.multi_reduction <add>, %15, %cst_15 [0] : vector<32x32xf32> to vector<32xf32>
    %17 = vector.shape_cast %16 : vector<32xf32> to vector<1x32xf32>
    %18 = vector.shape_cast %17 : vector<1x32xf32> to vector<1x1x32xf32>
    %19 = arith.addf %14, %18 : vector<1x1x32xf32>
    %c0_16 = arith.constant 0 : index
    %c1_17 = arith.constant 1 : index
    %c0_18 = arith.constant 0 : index
    %20 = vector.load %arg4[%c0_16, %c1_17, %c0_18] : memref<1x2x32xf32, #tpu.memory_space<vmem>>, vector<1x1x32xf32>
    tpu.vector_store %arg4[%c0_16, %c1_17, %c0_18], %19 {strides = array<i32>} : memref<1x2x32xf32, #tpu.memory_space<vmem>>, vector<1x1x32xf32>,
    return
  }
  func.func @transform_0(%arg0: i32, %arg1: i32) -> (i32, i32) {
    %c1_i32 = arith.constant 1 : i32
    %0 = arith.muli %arg0, %c1_i32 : i32
    %1 = arith.addi %0, %arg1 : i32
    %c0_i32 = arith.constant 0 : i32
    %c0_i32_0 = arith.constant 0 : i32
    return %1, %c0_i32 : i32, i32
  }
  func.func @transform_1(%arg0: i32, %arg1: i32) -> (i32, i32) {
    %c0_i32 = arith.constant 0 : i32
    %c0_i32_0 = arith.constant 0 : i32
    %c0_i32_1 = arith.constant 0 : i32
    return %c0_i32, %c0_i32_0 : i32, i32
  }
  func.func @transform_2(%arg0: i32, %arg1: i32) -> (i32, i32, i32) {
    %c0_i32 = arith.constant 0 : i32
    %c0_i32_0 = arith.constant 0 : i32
    %c0_i32_1 = arith.constant 0 : i32
    return %arg0, %c0_i32, %c0_i32_0 : i32, i32, i32
  }
  func.func @transform_3(%arg0: i32, %arg1: i32) -> (i32, i32) {
    %c1_i32 = arith.constant 1 : i32
    %0 = arith.muli %arg0, %c1_i32 : i32
    %1 = arith.addi %0, %arg1 : i32
    %c0_i32 = arith.constant 0 : i32
    %c0_i32_0 = arith.constant 0 : i32
    return %1, %c0_i32 : i32, i32
  }
}

module attributes {stable_mosaic.version = 11 : i64} {
  func.func @_stats3_kernel(%arg0: i32, %arg1: i32, %arg2: memref<32x32xbf16, #tpu.memory_space<vmem>>, %arg3: memref<32x32xbf16, #tpu.memory_space<vmem>>, %arg4: memref<32x32xbf16, #tpu.memory_space<vmem>>, %arg5: memref<2x32xf32, #tpu.memory_space<vmem>>, %arg6: memref<2x32xf32, #tpu.memory_space<vmem>>, %arg7: memref<1x2x32xf32, #tpu.memory_space<vmem>>) attributes {dimension_semantics = [#tpu.dimension_semantics<parallel>, #tpu.dimension_semantics<arbitrary>], iteration_bounds = array<i64: 1, 1>, scalar_prefetch = 0 : i64, scratch_operands = 0 : i64, tpu.core_type = #tpu.core_type<tc>, window_params = [{transform_indices = @transform_0, window_bounds = array<i64: 32, 32>}, {pipeline_mode = #tpu.pipeline_mode<synchronous>, transform_indices = @transform_1, window_bounds = array<i64: 32, 32>}, {pipeline_mode = #tpu.pipeline_mode<synchronous>, transform_indices = @transform_2, window_bounds = array<i64: 32, 32>}, {pipeline_mode = #tpu.pipeline_mode<synchronous>, transform_indices = @transform_3, window_bounds = array<i64: 2, 32>}, {pipeline_mode = #tpu.pipeline_mode<synchronous>, transform_indices = @transform_4, window_bounds = array<i64: 2, 32>}, {transform_indices = @transform_5, window_bounds = array<i64: 1, 2, 32>}]} {
    %c0_i32 = arith.constant 0 : i32
    %0 = arith.cmpi eq, %arg1, %c0_i32 : i32
    %1 = arith.extui %0 : i1 to i32
    %c0_i32_0 = arith.constant 0 : i32
    %2 = arith.cmpi ne, %1, %c0_i32_0 : i32
    scf.if %2 {
      %cst_30 = arith.constant 0.000000e+00 : f32
      %40 = vector.broadcast %cst_30 : f32 to vector<1x2x32xf32>
      %c0_31 = arith.constant 0 : index
      %c0_32 = arith.constant 0 : index
      %c0_33 = arith.constant 0 : index
      %41 = vector.load %arg7[%c0_31, %c0_32, %c0_33] : memref<1x2x32xf32, #tpu.memory_space<vmem>>, vector<1x2x32xf32>
      tpu.vector_store %arg7[%c0_31, %c0_32, %c0_33], %40 {strides = array<i32>} : memref<1x2x32xf32, #tpu.memory_space<vmem>>, vector<1x2x32xf32>,
    } else {
    }
    %c0 = arith.constant 0 : index
    %c0_1 = arith.constant 0 : index
    %3 = vector.load %arg2[%c0, %c0_1] : memref<32x32xbf16, #tpu.memory_space<vmem>>, vector<32x32xbf16>
    %c0_2 = arith.constant 0 : index
    %c0_3 = arith.constant 0 : index
    %4 = vector.load %arg3[%c0_2, %c0_3] : memref<32x32xbf16, #tpu.memory_space<vmem>>, vector<32x32xbf16>
    %cst = arith.constant dense<0.000000e+00> : vector<32x32xf32>
    %5 = tpu.matmul %3, %4, %cst {dimension_numbers = #tpu.dot_dimension_numbers<[1], [0], [0], [1], [0, 0, 1, 1], [], []>} : vector<32x32xbf16>, vector<32x32xbf16>, vector<32x32xf32> -> vector<32x32xf32>
    %c0_4 = arith.constant 0 : index
    %c0_5 = arith.constant 0 : index
    %6 = vector.load %arg5[%c0_4, %c0_5] : memref<2x32xf32, #tpu.memory_space<vmem>>, vector<1x32xf32>
    %7 = vector.broadcast %6 : vector<1x32xf32> to vector<32x32xf32>
    %8 = arith.mulf %5, %7 : vector<32x32xf32>
    %c1 = arith.constant 1 : index
    %c0_6 = arith.constant 0 : index
    %9 = vector.load %arg5[%c1, %c0_6] : memref<2x32xf32, #tpu.memory_space<vmem>>, vector<1x32xf32>
    %10 = vector.broadcast %9 : vector<1x32xf32> to vector<32x32xf32>
    %11 = arith.addf %8, %10 : vector<32x32xf32>
    %cst_7 = arith.constant 0.000000e+00 : f32
    %12 = vector.broadcast %cst_7 : f32 to vector<32x32xf32>
    %13 = arith.maximumf %11, %12 : vector<32x32xf32>
    %14 = arith.truncf %13 : vector<32x32xf32> to vector<32x32xbf16>
    %c0_8 = arith.constant 0 : index
    %c0_9 = arith.constant 0 : index
    %15 = vector.load %arg4[%c0_8, %c0_9] : memref<32x32xbf16, #tpu.memory_space<vmem>>, vector<32x32xbf16>
    %cst_10 = arith.constant dense<0.000000e+00> : vector<32x32xf32>
    %16 = tpu.matmul %14, %15, %cst_10 {dimension_numbers = #tpu.dot_dimension_numbers<[1], [0], [0], [1], [0, 0, 1, 1], [], []>} : vector<32x32xbf16>, vector<32x32xbf16>, vector<32x32xf32> -> vector<32x32xf32>
    %c0_11 = arith.constant 0 : index
    %c0_12 = arith.constant 0 : index
    %17 = vector.load %arg6[%c0_11, %c0_12] : memref<2x32xf32, #tpu.memory_space<vmem>>, vector<1x32xf32>
    %18 = vector.broadcast %17 : vector<1x32xf32> to vector<32x32xf32>
    %19 = arith.mulf %16, %18 : vector<32x32xf32>
    %c1_13 = arith.constant 1 : index
    %c0_14 = arith.constant 0 : index
    %20 = vector.load %arg6[%c1_13, %c0_14] : memref<2x32xf32, #tpu.memory_space<vmem>>, vector<1x32xf32>
    %21 = vector.broadcast %20 : vector<1x32xf32> to vector<32x32xf32>
    %22 = arith.addf %19, %21 : vector<32x32xf32>
    %cst_15 = arith.constant 0.000000e+00 : f32
    %23 = vector.broadcast %cst_15 : f32 to vector<32x32xf32>
    %24 = arith.maximumf %22, %23 : vector<32x32xf32>
    %25 = arith.extf %3 : vector<32x32xbf16> to vector<32x32xf32>
    %26 = arith.addf %25, %24 : vector<32x32xf32>
    %c0_16 = arith.constant 0 : index
    %c0_17 = arith.constant 0 : index
    %c0_18 = arith.constant 0 : index
    %27 = vector.load %arg7[%c0_16, %c0_17, %c0_18] : memref<1x2x32xf32, #tpu.memory_space<vmem>>, vector<1x1x32xf32>
    %cst_19 = arith.constant dense<0.000000e+00> : vector<32xf32>
    %28 = vector.multi_reduction <add>, %26, %cst_19 [0] : vector<32x32xf32> to vector<32xf32>
    %29 = vector.shape_cast %28 : vector<32xf32> to vector<1x32xf32>
    %30 = vector.shape_cast %29 : vector<1x32xf32> to vector<1x1x32xf32>
    %31 = arith.addf %27, %30 : vector<1x1x32xf32>
    %c0_20 = arith.constant 0 : index
    %c0_21 = arith.constant 0 : index
    %c0_22 = arith.constant 0 : index
    %32 = vector.load %arg7[%c0_20, %c0_21, %c0_22] : memref<1x2x32xf32, #tpu.memory_space<vmem>>, vector<1x1x32xf32>
    tpu.vector_store %arg7[%c0_20, %c0_21, %c0_22], %31 {strides = array<i32>} : memref<1x2x32xf32, #tpu.memory_space<vmem>>, vector<1x1x32xf32>,
    %c0_23 = arith.constant 0 : index
    %c1_24 = arith.constant 1 : index
    %c0_25 = arith.constant 0 : index
    %33 = vector.load %arg7[%c0_23, %c1_24, %c0_25] : memref<1x2x32xf32, #tpu.memory_space<vmem>>, vector<1x1x32xf32>
    %34 = arith.mulf %26, %26 : vector<32x32xf32>
    %cst_26 = arith.constant dense<0.000000e+00> : vector<32xf32>
    %35 = vector.multi_reduction <add>, %34, %cst_26 [0] : vector<32x32xf32> to vector<32xf32>
    %36 = vector.shape_cast %35 : vector<32xf32> to vector<1x32xf32>
    %37 = vector.shape_cast %36 : vector<1x32xf32> to vector<1x1x32xf32>
    %38 = arith.addf %33, %37 : vector<1x1x32xf32>
    %c0_27 = arith.constant 0 : index
    %c1_28 = arith.constant 1 : index
    %c0_29 = arith.constant 0 : index
    %39 = vector.load %arg7[%c0_27, %c1_28, %c0_29] : memref<1x2x32xf32, #tpu.memory_space<vmem>>, vector<1x1x32xf32>
    tpu.vector_store %arg7[%c0_27, %c1_28, %c0_29], %38 {strides = array<i32>} : memref<1x2x32xf32, #tpu.memory_space<vmem>>, vector<1x1x32xf32>,
    return
  }
  func.func @transform_0(%arg0: i32, %arg1: i32) -> (i32, i32) {
    %c1_i32 = arith.constant 1 : i32
    %0 = arith.muli %arg0, %c1_i32 : i32
    %1 = arith.addi %0, %arg1 : i32
    %c0_i32 = arith.constant 0 : i32
    %c0_i32_0 = arith.constant 0 : i32
    return %1, %c0_i32 : i32, i32
  }
  func.func @transform_1(%arg0: i32, %arg1: i32) -> (i32, i32) {
    %c0_i32 = arith.constant 0 : i32
    %c0_i32_0 = arith.constant 0 : i32
    %c0_i32_1 = arith.constant 0 : i32
    return %c0_i32, %c0_i32_0 : i32, i32
  }
  func.func @transform_2(%arg0: i32, %arg1: i32) -> (i32, i32) {
    %c0_i32 = arith.constant 0 : i32
    %c0_i32_0 = arith.constant 0 : i32
    %c0_i32_1 = arith.constant 0 : i32
    return %c0_i32, %c0_i32_0 : i32, i32
  }
  func.func @transform_3(%arg0: i32, %arg1: i32) -> (i32, i32) {
    %c0_i32 = arith.constant 0 : i32
    %c0_i32_0 = arith.constant 0 : i32
    %c0_i32_1 = arith.constant 0 : i32
    return %c0_i32, %c0_i32_0 : i32, i32
  }
  func.func @transform_4(%arg0: i32, %arg1: i32) -> (i32, i32) {
    %c0_i32 = arith.constant 0 : i32
    %c0_i32_0 = arith.constant 0 : i32
    %c0_i32_1 = arith.constant 0 : i32
    return %c0_i32, %c0_i32_0 : i32, i32
  }
  func.func @transform_5(%arg0: i32, %arg1: i32) -> (i32, i32, i32) {
    %c0_i32 = arith.constant 0 : i32
    %c0_i32_0 = arith.constant 0 : i32
    %c0_i32_1 = arith.constant 0 : i32
    return %arg0, %c0_i32, %c0_i32_0 : i32, i32, i32
  }
}

module attributes {stable_mosaic.version = 11 : i64} {
  func.func @_stats2_kernel(%arg0: i32, %arg1: i32, %arg2: memref<32x32xbf16, #tpu.memory_space<vmem>>, %arg3: memref<32x32xbf16, #tpu.memory_space<vmem>>, %arg4: memref<32x32xbf16, #tpu.memory_space<vmem>>, %arg5: memref<2x32xf32, #tpu.memory_space<vmem>>, %arg6: memref<1x2x32xf32, #tpu.memory_space<vmem>>) attributes {dimension_semantics = [#tpu.dimension_semantics<parallel>, #tpu.dimension_semantics<arbitrary>], iteration_bounds = array<i64: 1, 1>, scalar_prefetch = 0 : i64, scratch_operands = 0 : i64, tpu.core_type = #tpu.core_type<tc>, window_params = [{transform_indices = @transform_0, window_bounds = array<i64: 32, 32>}, {pipeline_mode = #tpu.pipeline_mode<synchronous>, transform_indices = @transform_1, window_bounds = array<i64: 32, 32>}, {pipeline_mode = #tpu.pipeline_mode<synchronous>, transform_indices = @transform_2, window_bounds = array<i64: 32, 32>}, {pipeline_mode = #tpu.pipeline_mode<synchronous>, transform_indices = @transform_3, window_bounds = array<i64: 2, 32>}, {transform_indices = @transform_4, window_bounds = array<i64: 1, 2, 32>}]} {
    %c0_i32 = arith.constant 0 : i32
    %0 = arith.cmpi eq, %arg1, %c0_i32 : i32
    %1 = arith.extui %0 : i1 to i32
    %c0_i32_0 = arith.constant 0 : i32
    %2 = arith.cmpi ne, %1, %c0_i32_0 : i32
    scf.if %2 {
      %cst_25 = arith.constant 0.000000e+00 : f32
      %30 = vector.broadcast %cst_25 : f32 to vector<1x2x32xf32>
      %c0_26 = arith.constant 0 : index
      %c0_27 = arith.constant 0 : index
      %c0_28 = arith.constant 0 : index
      %31 = vector.load %arg6[%c0_26, %c0_27, %c0_28] : memref<1x2x32xf32, #tpu.memory_space<vmem>>, vector<1x2x32xf32>
      tpu.vector_store %arg6[%c0_26, %c0_27, %c0_28], %30 {strides = array<i32>} : memref<1x2x32xf32, #tpu.memory_space<vmem>>, vector<1x2x32xf32>,
    } else {
    }
    %c0 = arith.constant 0 : index
    %c0_1 = arith.constant 0 : index
    %3 = vector.load %arg2[%c0, %c0_1] : memref<32x32xbf16, #tpu.memory_space<vmem>>, vector<32x32xbf16>
    %c0_2 = arith.constant 0 : index
    %c0_3 = arith.constant 0 : index
    %4 = vector.load %arg3[%c0_2, %c0_3] : memref<32x32xbf16, #tpu.memory_space<vmem>>, vector<32x32xbf16>
    %cst = arith.constant dense<0.000000e+00> : vector<32x32xf32>
    %5 = tpu.matmul %3, %4, %cst {dimension_numbers = #tpu.dot_dimension_numbers<[1], [0], [0], [1], [0, 0, 1, 1], [], []>} : vector<32x32xbf16>, vector<32x32xbf16>, vector<32x32xf32> -> vector<32x32xf32>
    %c0_4 = arith.constant 0 : index
    %c0_5 = arith.constant 0 : index
    %6 = vector.load %arg5[%c0_4, %c0_5] : memref<2x32xf32, #tpu.memory_space<vmem>>, vector<1x32xf32>
    %7 = vector.broadcast %6 : vector<1x32xf32> to vector<32x32xf32>
    %8 = arith.mulf %5, %7 : vector<32x32xf32>
    %c1 = arith.constant 1 : index
    %c0_6 = arith.constant 0 : index
    %9 = vector.load %arg5[%c1, %c0_6] : memref<2x32xf32, #tpu.memory_space<vmem>>, vector<1x32xf32>
    %10 = vector.broadcast %9 : vector<1x32xf32> to vector<32x32xf32>
    %11 = arith.addf %8, %10 : vector<32x32xf32>
    %cst_7 = arith.constant 0.000000e+00 : f32
    %12 = vector.broadcast %cst_7 : f32 to vector<32x32xf32>
    %13 = arith.maximumf %11, %12 : vector<32x32xf32>
    %14 = arith.truncf %13 : vector<32x32xf32> to vector<32x32xbf16>
    %c0_8 = arith.constant 0 : index
    %c0_9 = arith.constant 0 : index
    %15 = vector.load %arg4[%c0_8, %c0_9] : memref<32x32xbf16, #tpu.memory_space<vmem>>, vector<32x32xbf16>
    %cst_10 = arith.constant dense<0.000000e+00> : vector<32x32xf32>
    %16 = tpu.matmul %14, %15, %cst_10 {dimension_numbers = #tpu.dot_dimension_numbers<[1], [0], [0], [1], [0, 0, 1, 1], [], []>} : vector<32x32xbf16>, vector<32x32xbf16>, vector<32x32xf32> -> vector<32x32xf32>
    %c0_11 = arith.constant 0 : index
    %c0_12 = arith.constant 0 : index
    %c0_13 = arith.constant 0 : index
    %17 = vector.load %arg6[%c0_11, %c0_12, %c0_13] : memref<1x2x32xf32, #tpu.memory_space<vmem>>, vector<1x1x32xf32>
    %cst_14 = arith.constant dense<0.000000e+00> : vector<32xf32>
    %18 = vector.multi_reduction <add>, %16, %cst_14 [0] : vector<32x32xf32> to vector<32xf32>
    %19 = vector.shape_cast %18 : vector<32xf32> to vector<1x32xf32>
    %20 = vector.shape_cast %19 : vector<1x32xf32> to vector<1x1x32xf32>
    %21 = arith.addf %17, %20 : vector<1x1x32xf32>
    %c0_15 = arith.constant 0 : index
    %c0_16 = arith.constant 0 : index
    %c0_17 = arith.constant 0 : index
    %22 = vector.load %arg6[%c0_15, %c0_16, %c0_17] : memref<1x2x32xf32, #tpu.memory_space<vmem>>, vector<1x1x32xf32>
    tpu.vector_store %arg6[%c0_15, %c0_16, %c0_17], %21 {strides = array<i32>} : memref<1x2x32xf32, #tpu.memory_space<vmem>>, vector<1x1x32xf32>,
    %c0_18 = arith.constant 0 : index
    %c1_19 = arith.constant 1 : index
    %c0_20 = arith.constant 0 : index
    %23 = vector.load %arg6[%c0_18, %c1_19, %c0_20] : memref<1x2x32xf32, #tpu.memory_space<vmem>>, vector<1x1x32xf32>
    %24 = arith.mulf %16, %16 : vector<32x32xf32>
    %cst_21 = arith.constant dense<0.000000e+00> : vector<32xf32>
    %25 = vector.multi_reduction <add>, %24, %cst_21 [0] : vector<32x32xf32> to vector<32xf32>
    %26 = vector.shape_cast %25 : vector<32xf32> to vector<1x32xf32>
    %27 = vector.shape_cast %26 : vector<1x32xf32> to vector<1x1x32xf32>
    %28 = arith.addf %23, %27 : vector<1x1x32xf32>
    %c0_22 = arith.constant 0 : index
    %c1_23 = arith.constant 1 : index
    %c0_24 = arith.constant 0 : index
    %29 = vector.load %arg6[%c0_22, %c1_23, %c0_24] : memref<1x2x32xf32, #tpu.memory_space<vmem>>, vector<1x1x32xf32>
    tpu.vector_store %arg6[%c0_22, %c1_23, %c0_24], %28 {strides = array<i32>} : memref<1x2x32xf32, #tpu.memory_space<vmem>>, vector<1x1x32xf32>,
    return
  }
  func.func @transform_0(%arg0: i32, %arg1: i32) -> (i32, i32) {
    %c1_i32 = arith.constant 1 : i32
    %0 = arith.muli %arg0, %c1_i32 : i32
    %1 = arith.addi %0, %arg1 : i32
    %c0_i32 = arith.constant 0 : i32
    %c0_i32_0 = arith.constant 0 : i32
    return %1, %c0_i32 : i32, i32
  }
  func.func @transform_1(%arg0: i32, %arg1: i32) -> (i32, i32) {
    %c0_i32 = arith.constant 0 : i32
    %c0_i32_0 = arith.constant 0 : i32
    %c0_i32_1 = arith.constant 0 : i32
    return %c0_i32, %c0_i32_0 : i32, i32
  }
  func.func @transform_2(%arg0: i32, %arg1: i32) -> (i32, i32) {
    %c0_i32 = arith.constant 0 : i32
    %c0_i32_0 = arith.constant 0 : i32
    %c0_i32_1 = arith.constant 0 : i32
    return %c0_i32, %c0_i32_0 : i32, i32
  }
  func.func @transform_3(%arg0: i32, %arg1: i32) -> (i32, i32) {
    %c0_i32 = arith.constant 0 : i32
    %c0_i32_0 = arith.constant 0 : i32
    %c0_i32_1 = arith.constant 0 : i32
    return %c0_i32, %c0_i32_0 : i32, i32
  }
  func.func @transform_4(%arg0: i32, %arg1: i32) -> (i32, i32, i32) {
    %c0_i32 = arith.constant 0 : i32
    %c0_i32_0 = arith.constant 0 : i32
    %c0_i32_1 = arith.constant 0 : i32
    return %arg0, %c0_i32, %c0_i32_0 : i32, i32, i32
  }
}

module attributes {stable_mosaic.version = 11 : i64} {
  func.func @_apply_kernel(%arg0: i32, %arg1: memref<32x32xbf16, #tpu.memory_space<vmem>>, %arg2: memref<32x32xbf16, #tpu.memory_space<vmem>>, %arg3: memref<32x32xbf16, #tpu.memory_space<vmem>>, %arg4: memref<2x32xf32, #tpu.memory_space<vmem>>, %arg5: memref<2x32xf32, #tpu.memory_space<vmem>>, %arg6: memref<2x32xf32, #tpu.memory_space<vmem>>, %arg7: memref<32x32xf32, #tpu.memory_space<vmem>>) attributes {dimension_semantics = [#tpu.dimension_semantics<parallel>], iteration_bounds = array<i64: 1>, scalar_prefetch = 0 : i64, scratch_operands = 0 : i64, tpu.core_type = #tpu.core_type<tc>, window_params = [{transform_indices = @transform_0, window_bounds = array<i64: 32, 32>}, {pipeline_mode = #tpu.pipeline_mode<synchronous>, transform_indices = @transform_1, window_bounds = array<i64: 32, 32>}, {pipeline_mode = #tpu.pipeline_mode<synchronous>, transform_indices = @transform_2, window_bounds = array<i64: 32, 32>}, {pipeline_mode = #tpu.pipeline_mode<synchronous>, transform_indices = @transform_3, window_bounds = array<i64: 2, 32>}, {pipeline_mode = #tpu.pipeline_mode<synchronous>, transform_indices = @transform_4, window_bounds = array<i64: 2, 32>}, {pipeline_mode = #tpu.pipeline_mode<synchronous>, transform_indices = @transform_5, window_bounds = array<i64: 2, 32>}, {transform_indices = @transform_6, window_bounds = array<i64: 32, 32>}]} {
    %c0 = arith.constant 0 : index
    %c0_0 = arith.constant 0 : index
    %0 = vector.load %arg1[%c0, %c0_0] : memref<32x32xbf16, #tpu.memory_space<vmem>>, vector<32x32xbf16>
    %c0_1 = arith.constant 0 : index
    %c0_2 = arith.constant 0 : index
    %1 = vector.load %arg2[%c0_1, %c0_2] : memref<32x32xbf16, #tpu.memory_space<vmem>>, vector<32x32xbf16>
    %cst = arith.constant dense<0.000000e+00> : vector<32x32xf32>
    %2 = tpu.matmul %0, %1, %cst {dimension_numbers = #tpu.dot_dimension_numbers<[1], [0], [0], [1], [0, 0, 1, 1], [], []>} : vector<32x32xbf16>, vector<32x32xbf16>, vector<32x32xf32> -> vector<32x32xf32>
    %c0_3 = arith.constant 0 : index
    %c0_4 = arith.constant 0 : index
    %3 = vector.load %arg4[%c0_3, %c0_4] : memref<2x32xf32, #tpu.memory_space<vmem>>, vector<1x32xf32>
    %4 = vector.broadcast %3 : vector<1x32xf32> to vector<32x32xf32>
    %5 = arith.mulf %2, %4 : vector<32x32xf32>
    %c1 = arith.constant 1 : index
    %c0_5 = arith.constant 0 : index
    %6 = vector.load %arg4[%c1, %c0_5] : memref<2x32xf32, #tpu.memory_space<vmem>>, vector<1x32xf32>
    %7 = vector.broadcast %6 : vector<1x32xf32> to vector<32x32xf32>
    %8 = arith.addf %5, %7 : vector<32x32xf32>
    %cst_6 = arith.constant 0.000000e+00 : f32
    %9 = vector.broadcast %cst_6 : f32 to vector<32x32xf32>
    %10 = arith.maximumf %8, %9 : vector<32x32xf32>
    %11 = arith.truncf %10 : vector<32x32xf32> to vector<32x32xbf16>
    %c0_7 = arith.constant 0 : index
    %c0_8 = arith.constant 0 : index
    %12 = vector.load %arg3[%c0_7, %c0_8] : memref<32x32xbf16, #tpu.memory_space<vmem>>, vector<32x32xbf16>
    %cst_9 = arith.constant dense<0.000000e+00> : vector<32x32xf32>
    %13 = tpu.matmul %11, %12, %cst_9 {dimension_numbers = #tpu.dot_dimension_numbers<[1], [0], [0], [1], [0, 0, 1, 1], [], []>} : vector<32x32xbf16>, vector<32x32xbf16>, vector<32x32xf32> -> vector<32x32xf32>
    %c0_10 = arith.constant 0 : index
    %c0_11 = arith.constant 0 : index
    %14 = vector.load %arg5[%c0_10, %c0_11] : memref<2x32xf32, #tpu.memory_space<vmem>>, vector<1x32xf32>
    %15 = vector.broadcast %14 : vector<1x32xf32> to vector<32x32xf32>
    %16 = arith.mulf %13, %15 : vector<32x32xf32>
    %c1_12 = arith.constant 1 : index
    %c0_13 = arith.constant 0 : index
    %17 = vector.load %arg5[%c1_12, %c0_13] : memref<2x32xf32, #tpu.memory_space<vmem>>, vector<1x32xf32>
    %18 = vector.broadcast %17 : vector<1x32xf32> to vector<32x32xf32>
    %19 = arith.addf %16, %18 : vector<32x32xf32>
    %cst_14 = arith.constant 0.000000e+00 : f32
    %20 = vector.broadcast %cst_14 : f32 to vector<32x32xf32>
    %21 = arith.maximumf %19, %20 : vector<32x32xf32>
    %22 = arith.extf %0 : vector<32x32xbf16> to vector<32x32xf32>
    %23 = arith.addf %22, %21 : vector<32x32xf32>
    %c0_15 = arith.constant 0 : index
    %c0_16 = arith.constant 0 : index
    %24 = vector.load %arg6[%c0_15, %c0_16] : memref<2x32xf32, #tpu.memory_space<vmem>>, vector<1x32xf32>
    %25 = vector.broadcast %24 : vector<1x32xf32> to vector<32x32xf32>
    %26 = arith.mulf %23, %25 : vector<32x32xf32>
    %c1_17 = arith.constant 1 : index
    %c0_18 = arith.constant 0 : index
    %27 = vector.load %arg6[%c1_17, %c0_18] : memref<2x32xf32, #tpu.memory_space<vmem>>, vector<1x32xf32>
    %28 = vector.broadcast %27 : vector<1x32xf32> to vector<32x32xf32>
    %29 = arith.addf %26, %28 : vector<32x32xf32>
    %c0_19 = arith.constant 0 : index
    %c0_20 = arith.constant 0 : index
    %30 = vector.load %arg7[%c0_19, %c0_20] : memref<32x32xf32, #tpu.memory_space<vmem>>, vector<32x32xf32>
    tpu.vector_store %arg7[%c0_19, %c0_20], %29 {strides = array<i32>} : memref<32x32xf32, #tpu.memory_space<vmem>>, vector<32x32xf32>,
    return
  }
  func.func @transform_0(%arg0: i32) -> (i32, i32) {
    %c0_i32 = arith.constant 0 : i32
    %c0_i32_0 = arith.constant 0 : i32
    return %arg0, %c0_i32 : i32, i32
  }
  func.func @transform_1(%arg0: i32) -> (i32, i32) {
    %c0_i32 = arith.constant 0 : i32
    %c0_i32_0 = arith.constant 0 : i32
    %c0_i32_1 = arith.constant 0 : i32
    return %c0_i32, %c0_i32_0 : i32, i32
  }
  func.func @transform_2(%arg0: i32) -> (i32, i32) {
    %c0_i32 = arith.constant 0 : i32
    %c0_i32_0 = arith.constant 0 : i32
    %c0_i32_1 = arith.constant 0 : i32
    return %c0_i32, %c0_i32_0 : i32, i32
  }
  func.func @transform_3(%arg0: i32) -> (i32, i32) {
    %c0_i32 = arith.constant 0 : i32
    %c0_i32_0 = arith.constant 0 : i32
    %c0_i32_1 = arith.constant 0 : i32
    return %c0_i32, %c0_i32_0 : i32, i32
  }
  func.func @transform_4(%arg0: i32) -> (i32, i32) {
    %c0_i32 = arith.constant 0 : i32
    %c0_i32_0 = arith.constant 0 : i32
    %c0_i32_1 = arith.constant 0 : i32
    return %c0_i32, %c0_i32_0 : i32, i32
  }
  func.func @transform_5(%arg0: i32) -> (i32, i32) {
    %c0_i32 = arith.constant 0 : i32
    %c0_i32_0 = arith.constant 0 : i32
    %c0_i32_1 = arith.constant 0 : i32
    return %c0_i32, %c0_i32_0 : i32, i32
  }
  func.func @transform_6(%arg0: i32) -> (i32, i32) {
    %c0_i32 = arith.constant 0 : i32
    %c0_i32_0 = arith.constant 0 : i32
    return %arg0, %c0_i32 : i32, i32
  }
}

</mosaic_0001>

<bundles_post_ra>
// kernel: elementwise_mlp.7
= control target key start
LH: loop header
LB: loop body
LE: loop exit
PB: predicated region body
PF: predicated region fallthrough
CT: control target
= control target key end

     0   :  { %vm55_vm0 = vcmask 261120   ;;  %s442_s0 = inlined_call_operand.vmem [shape: bf16[32,32], index: 0, kind: input, shape index: {}]   ;;  %s443_s1 = inlined_call_operand.vmem [shape: bf16[32,32], index: 1, kind: input, shape index: {}]   ;;  %s444_s2 = inlined_call_operand.vmem [shape: bf16[32,32], index: 2, kind: input, shape index: {}]   ;;  %s445_s3 = inlined_call_operand.vmem [shape: f32[2,32], index: 3, kind: input, shape index: {}]   ;;  %s446_s4 = inlined_call_operand.vmem [shape: f32[2,32], index: 4, kind: input, shape index: {}]   ;;  %s447_s5 = inlined_call_operand.vmem [shape: f32[2,32], index: 5, kind: input, shape index: {}]   ;;  %s448_s6 = inlined_call_operand.hbm [shape: f32[32,32], index: 6, kind: output, shape index: {}]  }
   0x1   :  { %v317_v0 = vld [vmem:[%s443_s1 + $0x8] sm:$0xff]   ;;  %v318_v1 = vld [vmem:[%s443_s1] sm:$0xff]  }
   0x2   :  { %298 = vmatprep.subr.bf16.mxu0 %v317_v0  ;;  %v394_v2 = vld [vmem:[%s442_s0] sm:$0xff]   ;;  %v399_v3 = vld [vmem:[%s442_s0 + $0x8] sm:$0xff]  }
   0x3   :  { %299 = vmatpush3.bf16.msra.mxu0 %v317_v0 }
   0x4   :  { %300 = vmatprep.subr.bf16.mxu0 %v318_v1 }
   0x5   :  { %11 = vsyncpa [#allocation3], 0  ;;  %302 = vmatprep.mubr.msk.bf16.mxu0 %vm55_vm0, %v394_v2  ;;  %v321_v4 = vld [vmem:[%s444_s2 + $0x8] sm:$0xff]   ;;  %v322_v5 = vld [vmem:[%s444_s2] sm:$0xff]   ;;  %v230_v32 = vunpack.c.l.bf16 %v399_v3  ;;  %v228_v35 = vunpack.c.l.bf16 %v394_v2  ;;  %v231_v40 = vunpack.c.h.bf16 %v399_v3  ;;  %v229_v46 = vunpack.c.h.bf16 %v394_v2  ;;  %s347_s16 = smov [#allocation2]  }
   0x6   :  { %306 = vmatprep.subr.bf16.mxu1 %v321_v4  ;;  %v280_v7 = vld [vmem:[%s445_s3] ss:$0 sm:$0xff]  ;;  %v281_v12 = vld [vmem:[%s445_s3 + $0x1] ss:$0 sm:$0xff]  ;;  %s263_s17 = sshll.u32 %s347_s16, 4  ;;  %s264_s17 = int_to_ptr.vmem [resolvable:$true] %s263_s17 }
   0x7   :  { %301 = vmatpush3.bf16.msra.mxu0 %v318_v1  ;;  %307 = vmatpush3.bf16.msra.mxu1 %v321_v4  ;;  %v286_v26 = vld [vmem:[%s446_s4] ss:$0 sm:$0xff]  ;;  %v287_v28 = vld [vmem:[%s446_s4 + $0x1] ss:$0 sm:$0xff]  ;;  %p330_p1 = scmp.lt.s32.totalorder %s264_s17, %s264_s17 }
   0x8   :  { %308 = vmatprep.subr.bf16.mxu1 %v322_v5  ;;  %v288_v39 = vld [vmem:[%s447_s5] ss:$0 sm:$0xff]  ;;  %v289_v47 = vld [vmem:[%s447_s5 + $0x1] ss:$0 sm:$0xff]  ;;  %s325_s5 = scalar_lea.vmem %s264_s17, 512 }
   0x9   :  { %p326_p0 = scmp.ne.s32.totalorder %s264_s17, %s325_s5  ;;  %p331_p2 = scmp.lt.s32.totalorder %s325_s5, %s325_s5 }
   0xa   :  { %303 = vmatmul.mubr.msk.bf16.vlgmr.msra.gmra.mxu0 %vm55_vm0, %v399_v3 }
   0xb   :  { %309 = vmatpush3.bf16.msra.mxu1 %v322_v5  ;;  %p332_p3 = por %p331_p2, %p330_p1 }
   0xd   :  { %p333_p4 = pnand %p332_p3, %p326_p0 }
  0xca   :  { %v304_v6 = vpop.f32.mrf.mxu0 }
  0xcb   :  { %v118_v10 = vmul.f32 %v304_v6, %v280_v7 }
  0xcc   :  { %v96_v8 = vpop.f32.mrf.mxu0 }
  0xcd   :  { %v116_v9 = vmul.f32 %v280_v7, %v96_v8  ;;  %v127_v18 = vadd.f32 %v281_v12, %v118_v10 }
  0xce   :  { %v305_v11 = vpop.f32.mrf.mxu0 }
  0xcf   :  { %v119_v13 = vmul.f32 %v305_v11, %v280_v7  ;;  %v125_v15 = vadd.f32 %v281_v12, %v116_v9  ;;  %v131_v23 = vmax.f32 %v127_v18, 0.0 }
  0xd0   :  { %v99_v14 = vpop.f32.mrf.mxu0 }
  0xd1   :  { %v128_v16 = vadd.f32 %v281_v12, %v119_v13  ;;  %v117_v17 = vmul.f32 %v280_v7, %v99_v14  ;;  %v129_v21 = vmax.f32 %v125_v15, 0.0 }
  0xd3   :  { %v126_v19 = vadd.f32 %v281_v12, %v117_v17  ;;  %v132_v20 = vmax.f32 %v128_v16, 0.0 }
  0xd5   :  { %v130_v22 = vmax.f32 %v126_v19, 0.0  ;;  %v134_v25 = vpack.c.bf16 %v132_v20, %v131_v23 }
  0xd7   :  { %v133_v24 = vpack.c.bf16 %v130_v22, %v129_v21 }
  0xd9   :  { %310 = vmatprep.mubr.msk.bf16.mxu1 %vm55_vm0, %v133_v24 }
  0xda   :  { %311 = vmatmul.mubr.msk.bf16.vlgmr.msra.gmra.mxu1 %vm55_vm0, %v134_v25 }
 0x19a   :  { %v312_v27 = vpop.f32.mrf.mxu1 }
 0x19b   :  { %v213_v29 = vmul.f32 %v312_v27, %v286_v26 }
 0x19c   :  { %v191_v30 = vpop.f32.mrf.mxu1 }
 0x19d   :  { %v222_v31 = vadd.f32 %v287_v28, %v213_v29  ;;  %v211_v33 = vmul.f32 %v286_v26, %v191_v30 }
 0x19e   :  { %v313_v34 = vpop.f32.mrf.mxu1 }
 0x19f   :  { %v226_v36 = vmax.f32 %v222_v31, 0.0  ;;  %v220_v37 = vadd.f32 %v287_v28, %v211_v33  ;;  %v214_v38 = vmul.f32 %v313_v34, %v286_v26 }
 0x1a0   :  { %v194_v41 = vpop.f32.mrf.mxu1 }
 0x1a1   :  { %v234_v42 = vadd.f32 %v230_v32, %v226_v36  ;;  %v224_v43 = vmax.f32 %v220_v37, 0.0  ;;  %v223_v44 = vadd.f32 %v287_v28, %v214_v38  ;;  %v212_v45 = vmul.f32 %v286_v26, %v194_v41 }
 0x1a3   :  { %v243_v48 = vmul.f32 %v288_v39, %v234_v42  ;;  %v232_v49 = vadd.f32 %v228_v35, %v224_v43  ;;  %v227_v50 = vmax.f32 %v223_v44, 0.0  ;;  %v221_v51 = vadd.f32 %v287_v28, %v212_v45 }
 0x1a5   :  { %v252_v52 = vadd.f32 %v289_v47, %v243_v48  ;;  %v241_v53 = vmul.f32 %v288_v39, %v232_v49  ;;  %v235_v54 = vadd.f32 %v231_v40, %v227_v50  ;;  %v225_v55 = vmax.f32 %v221_v51, 0.0 }
 0x1a7   :  { %256 = vst.msk [vmem:[#allocation2 + $0x10] sm:$0xff] %vm55_vm0, %v252_v52  ;;  %v250_v56 = vadd.f32 %v289_v47, %v241_v53  ;;  %v244_v57 = vmul.f32 %v288_v39, %v235_v54  ;;  %v233_v58 = vadd.f32 %v229_v46, %v225_v55 }
 0x1a9   :  { %254 = vst.msk [vmem:[#allocation2] sm:$0xff] %vm55_vm0, %v250_v56  ;;  %v253_v59 = vadd.f32 %v289_v47, %v244_v57  ;;  %v242_v60 = vmul.f32 %v288_v39, %v233_v58 }
 0x1ab   :  { %257 = vst.msk [vmem:[#allocation2 + $0x18] sm:$0xff] %vm55_vm0, %v253_v59  ;;  %v251_v61 = vadd.f32 %v289_v47, %v242_v60 }
 0x1ad   :  { %255 = vst.msk [vmem:[#allocation2 + $0x8] sm:$0xff] %vm55_vm0, %v251_v61 }
 0x1ae   :  { %336 = shalt.err (!%p333_p4)
}
 0x1af   :  { %s348_s18 = smov 128   ;;  %s349_s19 = smov 8  }
 0x1b0   :  { %269 = dma.vmem_to_hbm [thread:$0]  %s264_s17, 512, %s448_s6, [#allocation3], %s348_s18, %s348_s18, %s349_s19  }
 0x1b1   :  { %345 = dma.done.wait [#allocation3], 512  }
 0x1b2   :  { %346 = vsyncadd [#allocation3], 4294966784 }
 0x1b3   :  { %273 = vsyncpa [#allocation3], 1 }

// kernel: elementwise_mlp.4
= control target key start
LH: loop header
LB: loop body
LE: loop exit
PB: predicated region body
PF: predicated region fallthrough
CT: control target
= control target key end

     0   :  { %vm76_vm0 = vcmask 257024   ;;  %vm97_vm1 = vcmask 261120   ;;  %vm54_vm2 = vcmask 254976   ;;  %v253_v12 = vmov 0.0   ;;  %s333_s1 = inlined_call_operand.vmem [shape: bf16[32,32], index: 1, kind: input, shape index: {}]   ;;  %s334_s0 = inlined_call_operand.vmem [shape: f32[32,32], index: 0, kind: input, shape index: {}]   ;;  %s335_s3 = inlined_call_operand.vmem [shape: bf16[32,32], index: 3, kind: output, shape index: {1}]   ;;  %s336_s2 = inlined_call_operand.vmem [shape: f32[1,2,32], index: 2, kind: output, shape index: {0}]  }
   0x1   :  { %v251_v0 = vld [vmem:[%s333_s1 + $0x8] sm:$0xff]   ;;  %v252_v1 = vld [vmem:[%s333_s1] sm:$0xff]   ;;  %v58_v4 = vld [vmem:[%s334_s0 + $0x10] sm:$0xff]  ;;  %55 = vst.msk [vmem:[%s336_s2] sm:$0x3] %vm54_vm2, %v253_v12  ;;  %vm168_vm3 = vcmask 253952  }
   0x2   :  { %242 = vmatprep.subr.bf16.mxu0 %v251_v0  ;;  %v56_v2 = vld [vmem:[%s334_s0] sm:$0xff]  ;;  %v57_v3 = vld [vmem:[%s334_s0 + $0x8] sm:$0xff]  ;;  %v59_v8 = vld [vmem:[%s334_s0 + $0x18] sm:$0xff]  ;;  %v236_v9 = vpack.c.bf16 %v58_v4, %v58_v4 }
   0x3   :  { %243 = vmatpush3.bf16.msra.mxu0 %v251_v0  ;;  %v60_v5 = vpack.c.bf16 %v57_v3, %v56_v2  ;;  %v234_v6 = vpack.c.bf16 %v56_v2, %v56_v2  ;;  %v235_v7 = vpack.c.bf16 %v57_v3, %v57_v3  ;;  %v237_v10 = vpack.c.bf16 %v59_v8, %v59_v8 }
   0x4   :  { %244 = vmatprep.subr.bf16.mxu0 %v252_v1  ;;  %79 = vst.msk [vmem:[%s335_s3 + $0x8] sm:$0xf] %vm76_vm0, %v236_v9  ;;  %v61_v11 = vpack.c.bf16 %v59_v8, %v58_v4 }
   0x5   :  { %77 = vst.msk [vmem:[%s335_s3] sm:$0xf] %vm76_vm0, %v234_v6  ;;  %78 = vst.msk [vmem:[%s335_s3 + $0x4] sm:$0xf] %vm76_vm0, %v235_v7  ;;  %246 = vmatprep.mubr.msk.bf16.mxu0 %vm97_vm1, %v60_v5 }
   0x6   :  { %80 = vst.msk [vmem:[%s335_s3 + $0xc] sm:$0xf] %vm76_vm0, %v237_v10 }
   0x7   :  { %245 = vmatpush3.bf16.msra.mxu0 %v252_v1 }
   0x8   :  { %v153_v44 = vld [vmem:[%s336_s2] sm:$0x1]  ;;  %v170_v47 = vld [vmem:[%s336_s2 + $0x1] sm:$0x1] }
   0xa   :  { %247 = vmatmul.mubr.msk.bf16.vlgmr.msra.gmra.mxu0 %vm97_vm1, %v61_v11 }
  0xca   :  { %v248_v13 = vpop.f32.mrf.mxu0 }
  0xcb   :  { %v173_v18 = vmul.f32 %v248_v13, %v248_v13  ;;  %v157_v23 = vsel %vm97_vm1, %v248_v13, 0.0 }
  0xcc   :  { %v138_v14 = vpop.f32.mrf.mxu0 }
  0xcd   :  { %v171_v16 = vmul.f32 %v138_v14, %v138_v14  ;;  %v154_v19 = vsel %vm97_vm1, %v138_v14, 0.0  ;;  %v178_v29 = vsel %vm97_vm1, %v173_v18, 0.0 }
  0xce   :  { %v249_v15 = vpop.f32.mrf.mxu0 }
  0xcf   :  { %v175_v24 = vsel %vm97_vm1, %v171_v16, 0.0  ;;  %v174_v25 = vmul.f32 %v249_v15, %v249_v15  ;;  %v159_v30 = vsel %vm97_vm1, %v249_v15, 0.0 }
  0xd0   :  { %v141_v17 = vpop.f32.mrf.mxu0 }
  0xd1   :  { %v155_v20 = vsel %vm97_vm1, %v141_v17, 0.0  ;;  %v172_v21 = vmul.f32 %v141_v17, %v141_v17  ;;  %v180_v33 = vsel %vm97_vm1, %v174_v25, 0.0 }
  0xd2   :  { %v156_v22 = vadd.f32 %v155_v20, %v154_v19 }
  0xd3   :  { %v176_v26 = vsel %vm97_vm1, %v172_v21, 0.0 }
  0xd4   :  { %v158_v27 = vadd.f32 %v157_v23, %v156_v22  ;;  %v177_v28 = vadd.f32 %v176_v26, %v175_v24 }
  0xd6   :  { %v160_v31 = vadd.f32 %v159_v30, %v158_v27  ;;  %v179_v32 = vadd.f32 %v178_v29, %v177_v28 }
  0xd8   :  { %v161_v34 = vrot.slane %v160_v31, 4  ;;  %v181_v35 = vadd.f32 %v180_v33, %v179_v32 }
  0xda   :  { %v162_v36 = vadd.f32 %v161_v34, %v160_v31  ;;  %v182_v37 = vrot.slane %v181_v35, 4 }
  0xdc   :  { %v163_v38 = vrot.slane %v162_v36, 2  ;;  %v183_v39 = vadd.f32 %v182_v37, %v181_v35 }
  0xde   :  { %v164_v40 = vadd.f32 %v163_v38, %v162_v36  ;;  %v184_v41 = vrot.slane %v183_v39, 2 }
  0xe0   :  { %v165_v42 = vrot.slane %v164_v40, 1  ;;  %v185_v43 = vadd.f32 %v184_v41, %v183_v39 }
  0xe2   :  { %v166_v45 = vadd.f32 %v165_v42, %v164_v40  ;;  %v186_v46 = vrot.slane %v185_v43, 1 }
  0xe4   :  { %v167_v48 = vadd.f32 %v166_v45, %v153_v44  ;;  %v187_v49 = vadd.f32 %v186_v46, %v185_v43 }
  0xe6   :  { %169 = vst.msk [vmem:[%s336_s2] sm:$0x1] %vm168_vm3, %v167_v48  ;;  %v188_v50 = vadd.f32 %v187_v49, %v170_v47 }
  0xe8   :  { %189 = vst.msk [vmem:[%s336_s2 + $0x1] sm:$0x1] %vm168_vm3, %v188_v50 }

// kernel: elementwise_mlp.5
= control target key start
LH: loop header
LB: loop body
LE: loop exit
PB: predicated region body
PF: predicated region fallthrough
CT: control target
= control target key end

     0   :  { %vm76_vm0 = vcmask 261120   ;;  %vm44_vm1 = vcmask 254976   ;;  %v317_v26 = vmov 0.0   ;;  %vm242_vm2 = vcmask 253952   ;;  %s394_s1 = inlined_call_operand.vmem [shape: bf16[32,32], index: 1, kind: input, shape index: {}]   ;;  %s395_s0 = inlined_call_operand.vmem [shape: bf16[32,32], index: 0, kind: input, shape index: {}]   ;;  %s396_s2 = inlined_call_operand.vmem [shape: bf16[32,32], index: 2, kind: input, shape index: {}]   ;;  %s397_s3 = inlined_call_operand.vmem [shape: f32[2,32], index: 3, kind: input, shape index: {}]   ;;  %s398_s4 = inlined_call_operand.vmem [shape: f32[1,2,32], index: 4, kind: output, shape index: {}]  }
   0x1   :  { %v311_v0 = vld [vmem:[%s394_s1 + $0x8] sm:$0xff]   ;;  %v312_v1 = vld [vmem:[%s394_s1] sm:$0xff]   ;;  %45 = vst.msk [vmem:[%s398_s4] sm:$0x3] %vm44_vm1, %v317_v26 }
   0x2   :  { %294 = vmatprep.subr.bf16.mxu0 %v311_v0  ;;  %v313_v2 = vld [vmem:[%s395_s0] sm:$0xff]   ;;  %v314_v3 = vld [vmem:[%s395_s0 + $0x8] sm:$0xff]  }
   0x3   :  { %295 = vmatpush3.bf16.msra.mxu0 %v311_v0  ;;  %298 = vmatprep.mubr.msk.bf16.mxu0 %vm76_vm0, %v313_v2  ;;  %v315_v4 = vld [vmem:[%s396_s2 + $0x8] sm:$0xff]   ;;  %v316_v5 = vld [vmem:[%s396_s2] sm:$0xff]  }
   0x4   :  { %296 = vmatprep.subr.bf16.mxu0 %v312_v1  ;;  %302 = vmatprep.subr.bf16.mxu1 %v315_v4  ;;  %v280_v7 = vld [vmem:[%s397_s3] ss:$0 sm:$0xff]  ;;  %v281_v12 = vld [vmem:[%s397_s3 + $0x1] ss:$0 sm:$0xff] }
   0x5   :  { %303 = vmatpush3.bf16.msra.mxu1 %v315_v4 }
   0x6   :  { %304 = vmatprep.subr.bf16.mxu1 %v316_v5 }
   0x7   :  { %297 = vmatpush3.bf16.msra.mxu0 %v312_v1 }
   0x8   :  { %v227_v58 = vld [vmem:[%s398_s4] sm:$0x1]  ;;  %v244_v61 = vld [vmem:[%s398_s4 + $0x1] sm:$0x1] }
   0x9   :  { %305 = vmatpush3.bf16.msra.mxu1 %v316_v5 }
   0xa   :  { %299 = vmatmul.mubr.msk.bf16.vlgmr.msra.gmra.mxu0 %vm76_vm0, %v314_v3 }
  0xca   :  { %v300_v6 = vpop.f32.mrf.mxu0 }
  0xcb   :  { %v139_v10 = vmul.f32 %v300_v6, %v280_v7 }
  0xcc   :  { %v117_v8 = vpop.f32.mrf.mxu0 }
  0xcd   :  { %v137_v9 = vmul.f32 %v280_v7, %v117_v8  ;;  %v148_v18 = vadd.f32 %v281_v12, %v139_v10 }
  0xce   :  { %v301_v11 = vpop.f32.mrf.mxu0 }
  0xcf   :  { %v140_v13 = vmul.f32 %v301_v11, %v280_v7  ;;  %v146_v15 = vadd.f32 %v281_v12, %v137_v9  ;;  %v152_v23 = vmax.f32 %v148_v18, 0.0 }
  0xd0   :  { %v120_v14 = vpop.f32.mrf.mxu0 }
  0xd1   :  { %v149_v16 = vadd.f32 %v281_v12, %v140_v13  ;;  %v138_v17 = vmul.f32 %v280_v7, %v120_v14  ;;  %v150_v21 = vmax.f32 %v146_v15, 0.0 }
  0xd3   :  { %v147_v19 = vadd.f32 %v281_v12, %v138_v17  ;;  %v153_v20 = vmax.f32 %v149_v16, 0.0 }
  0xd5   :  { %v151_v22 = vmax.f32 %v147_v19, 0.0  ;;  %v155_v25 = vpack.c.bf16 %v153_v20, %v152_v23 }
  0xd7   :  { %v154_v24 = vpack.c.bf16 %v151_v22, %v150_v21 }
  0xd9   :  { %306 = vmatprep.mubr.msk.bf16.mxu1 %vm76_vm0, %v154_v24 }
  0xda   :  { %307 = vmatmul.mubr.msk.bf16.vlgmr.msra.gmra.mxu1 %vm76_vm0, %v155_v25 }
 0x19a   :  { %v308_v27 = vpop.f32.mrf.mxu1 }
 0x19b   :  { %v247_v32 = vmul.f32 %v308_v27, %v308_v27  ;;  %v231_v37 = vsel %vm76_vm0, %v308_v27, 0.0 }
 0x19c   :  { %v212_v28 = vpop.f32.mrf.mxu1 }
 0x19d   :  { %v245_v30 = vmul.f32 %v212_v28, %v212_v28  ;;  %v228_v33 = vsel %vm76_vm0, %v212_v28, 0.0  ;;  %v252_v43 = vsel %vm76_vm0, %v247_v32, 0.0 }
 0x19e   :  { %v309_v29 = vpop.f32.mrf.mxu1 }
 0x19f   :  { %v249_v38 = vsel %vm76_vm0, %v245_v30, 0.0  ;;  %v248_v39 = vmul.f32 %v309_v29, %v309_v29  ;;  %v233_v44 = vsel %vm76_vm0, %v309_v29, 0.0 }
 0x1a0   :  { %v215_v31 = vpop.f32.mrf.mxu1 }
 0x1a1   :  { %v229_v34 = vsel %vm76_vm0, %v215_v31, 0.0  ;;  %v246_v35 = vmul.f32 %v215_v31, %v215_v31  ;;  %v254_v47 = vsel %vm76_vm0, %v248_v39, 0.0 }
 0x1a2   :  { %v230_v36 = vadd.f32 %v229_v34, %v228_v33 }
 0x1a3   :  { %v250_v40 = vsel %vm76_vm0, %v246_v35, 0.0 }
 0x1a4   :  { %v232_v41 = vadd.f32 %v231_v37, %v230_v36  ;;  %v251_v42 = vadd.f32 %v250_v40, %v249_v38 }
 0x1a6   :  { %v234_v45 = vadd.f32 %v233_v44, %v232_v41  ;;  %v253_v46 = vadd.f32 %v252_v43, %v251_v42 }
 0x1a8   :  { %v235_v48 = vrot.slane %v234_v45, 4  ;;  %v255_v49 = vadd.f32 %v254_v47, %v253_v46 }
 0x1aa   :  { %v236_v50 = vadd.f32 %v235_v48, %v234_v45  ;;  %v256_v51 = vrot.slane %v255_v49, 4 }
 0x1ac   :  { %v237_v52 = vrot.slane %v236_v50, 2  ;;  %v257_v53 = vadd.f32 %v256_v51, %v255_v49 }
 0x1ae   :  { %v238_v54 = vadd.f32 %v237_v52, %v236_v50  ;;  %v258_v55 = vrot.slane %v257_v53, 2 }
 0x1b0   :  { %v239_v56 = vrot.slane %v238_v54, 1  ;;  %v259_v57 = vadd.f32 %v258_v55, %v257_v53 }
 0x1b2   :  { %v240_v59 = vadd.f32 %v239_v56, %v238_v54  ;;  %v260_v60 = vrot.slane %v259_v57, 1 }
 0x1b4   :  { %v241_v62 = vadd.f32 %v240_v59, %v227_v58  ;;  %v261_v63 = vadd.f32 %v260_v60, %v259_v57 }
 0x1b6   :  { %243 = vst.msk [vmem:[%s398_s4] sm:$0x1] %vm242_vm2, %v241_v62  ;;  %v262_v0 = vadd.f32 %v261_v63, %v244_v61 }
 0x1b8   :  { %263 = vst.msk [vmem:[%s398_s4 + $0x1] sm:$0x1] %vm242_vm2, %v262_v0 }

// kernel: elementwise_mlp.6
= control target key start
LH: loop header
LB: loop body
LE: loop exit
PB: predicated region body
PF: predicated region fallthrough
CT: control target
= control target key end

     0   :  { %vm79_vm0 = vcmask 261120   ;;  %vm47_vm1 = vcmask 254976   ;;  %v354_v26 = vmov 0.0   ;;  %vm275_vm2 = vcmask 253952   ;;  %s452_s1 = inlined_call_operand.vmem [shape: bf16[32,32], index: 1, kind: input, shape index: {}]   ;;  %s453_s0 = inlined_call_operand.vmem [shape: bf16[32,32], index: 0, kind: input, shape index: {}]   ;;  %s454_s2 = inlined_call_operand.vmem [shape: bf16[32,32], index: 2, kind: input, shape index: {}]   ;;  %s455_s3 = inlined_call_operand.vmem [shape: f32[2,32], index: 3, kind: input, shape index: {}]   ;;  %s456_s5 = inlined_call_operand.vmem [shape: f32[1,2,32], index: 5, kind: output, shape index: {}]   ;;  %s457_s4 = inlined_call_operand.vmem [shape: f32[2,32], index: 4, kind: input, shape index: {}]  }
   0x1   :  { %v346_v0 = vld [vmem:[%s452_s1 + $0x8] sm:$0xff]   ;;  %v347_v1 = vld [vmem:[%s452_s1] sm:$0xff]   ;;  %48 = vst.msk [vmem:[%s456_s5] sm:$0x3] %vm47_vm1, %v354_v26 }
   0x2   :  { %329 = vmatprep.subr.bf16.mxu0 %v346_v0  ;;  %v394_v2 = vld [vmem:[%s453_s0] sm:$0xff]   ;;  %v399_v3 = vld [vmem:[%s453_s0 + $0x8] sm:$0xff]  }
   0x3   :  { %330 = vmatpush3.bf16.msra.mxu0 %v346_v0  ;;  %333 = vmatprep.mubr.msk.bf16.mxu0 %vm79_vm0, %v394_v2  ;;  %v350_v4 = vld [vmem:[%s454_s2 + $0x8] sm:$0xff]   ;;  %v351_v5 = vld [vmem:[%s454_s2] sm:$0xff]   ;;  %v252_v37 = vunpack.c.l.bf16 %v394_v2  ;;  %v254_v43 = vunpack.c.l.bf16 %v399_v3  ;;  %v253_v44 = vunpack.c.h.bf16 %v394_v2  ;;  %v255_v47 = vunpack.c.h.bf16 %v399_v3 }
   0x4   :  { %331 = vmatprep.subr.bf16.mxu0 %v347_v1  ;;  %337 = vmatprep.subr.bf16.mxu1 %v350_v4  ;;  %v313_v7 = vld [vmem:[%s455_s3] ss:$0 sm:$0xff]  ;;  %v314_v12 = vld [vmem:[%s455_s3 + $0x1] ss:$0 sm:$0xff] }
   0x5   :  { %338 = vmatpush3.bf16.msra.mxu1 %v350_v4  ;;  %v319_v27 = vld [vmem:[%s457_s4] ss:$0 sm:$0xff]  ;;  %v320_v30 = vld [vmem:[%s457_s4 + $0x1] ss:$0 sm:$0xff] }
   0x6   :  { %339 = vmatprep.subr.bf16.mxu1 %v351_v5 }
   0x7   :  { %332 = vmatpush3.bf16.msra.mxu0 %v347_v1 }
   0x9   :  { %340 = vmatpush3.bf16.msra.mxu1 %v351_v5 }
   0xa   :  { %334 = vmatmul.mubr.msk.bf16.vlgmr.msra.gmra.mxu0 %vm79_vm0, %v399_v3 }
  0xca   :  { %v335_v6 = vpop.f32.mrf.mxu0 }
  0xcb   :  { %v142_v10 = vmul.f32 %v335_v6, %v313_v7 }
  0xcc   :  { %v120_v8 = vpop.f32.mrf.mxu0 }
  0xcd   :  { %v140_v9 = vmul.f32 %v313_v7, %v120_v8  ;;  %v151_v18 = vadd.f32 %v314_v12, %v142_v10 }
  0xce   :  { %v336_v11 = vpop.f32.mrf.mxu0 }
  0xcf   :  { %v143_v13 = vmul.f32 %v336_v11, %v313_v7  ;;  %v149_v15 = vadd.f32 %v314_v12, %v140_v9  ;;  %v155_v23 = vmax.f32 %v151_v18, 0.0 }
  0xd0   :  { %v123_v14 = vpop.f32.mrf.mxu0 }
  0xd1   :  { %v152_v16 = vadd.f32 %v314_v12, %v143_v13  ;;  %v141_v17 = vmul.f32 %v313_v7, %v123_v14  ;;  %v153_v21 = vmax.f32 %v149_v15, 0.0 }
  0xd3   :  { %v150_v19 = vadd.f32 %v314_v12, %v141_v17  ;;  %v156_v20 = vmax.f32 %v152_v16, 0.0  ;;  %v260_v16 = vld [vmem:[%s456_s5] sm:$0x1] }
  0xd5   :  { %v154_v22 = vmax.f32 %v150_v19, 0.0  ;;  %v158_v25 = vpack.c.bf16 %v156_v20, %v155_v23  ;;  %v277_v19 = vld [vmem:[%s456_s5 + $0x1] sm:$0x1] }
  0xd7   :  { %v157_v24 = vpack.c.bf16 %v154_v22, %v153_v21 }
  0xd9   :  { %341 = vmatprep.mubr.msk.bf16.mxu1 %vm79_vm0, %v157_v24 }
  0xda   :  { %342 = vmatmul.mubr.msk.bf16.vlgmr.msra.gmra.mxu1 %vm79_vm0, %v158_v25 }
 0x19a   :  { %v343_v28 = vpop.f32.mrf.mxu1 }
 0x19b   :  { %v237_v29 = vmul.f32 %v343_v28, %v319_v27 }
 0x19c   :  { %v215_v31 = vpop.f32.mrf.mxu1 }
 0x19d   :  { %v235_v32 = vmul.f32 %v319_v27, %v215_v31  ;;  %v246_v33 = vadd.f32 %v320_v30, %v237_v29 }
 0x19e   :  { %v344_v34 = vpop.f32.mrf.mxu1 }
 0x19f   :  { %v244_v35 = vadd.f32 %v320_v30, %v235_v32  ;;  %v238_v36 = vmul.f32 %v344_v34, %v319_v27  ;;  %v250_v42 = vmax.f32 %v246_v33, 0.0 }
 0x1a0   :  { %v218_v38 = vpop.f32.mrf.mxu1 }
 0x1a1   :  { %v248_v39 = vmax.f32 %v244_v35, 0.0  ;;  %v247_v40 = vadd.f32 %v320_v30, %v238_v36  ;;  %v236_v41 = vmul.f32 %v319_v27, %v218_v38  ;;  %v258_v49 = vadd.f32 %v254_v43, %v250_v42 }
 0x1a3   :  { %v256_v45 = vadd.f32 %v252_v37, %v248_v39  ;;  %v251_v46 = vmax.f32 %v247_v40, 0.0  ;;  %v245_v48 = vadd.f32 %v320_v30, %v236_v41  ;;  %v280_v54 = vmul.f32 %v258_v49, %v258_v49 }
 0x1a4   :  { %v264_v59 = vsel %vm79_vm0, %v258_v49, 0.0 }
 0x1a5   :  { %v249_v50 = vmax.f32 %v245_v48, 0.0  ;;  %v278_v51 = vmul.f32 %v256_v45, %v256_v45  ;;  %v259_v52 = vadd.f32 %v255_v47, %v251_v46  ;;  %v261_v55 = vsel %vm79_vm0, %v256_v45, 0.0 }
 0x1a6   :  { %v285_v1 = vsel %vm79_vm0, %v280_v54, 0.0 }
 0x1a7   :  { %v257_v53 = vadd.f32 %v253_v44, %v249_v50  ;;  %v282_v60 = vsel %vm79_vm0, %v278_v51, 0.0  ;;  %v281_v61 = vmul.f32 %v259_v52, %v259_v52  ;;  %v266_v2 = vsel %vm79_vm0, %v259_v52, 0.0 }
 0x1a9   :  { %v262_v56 = vsel %vm79_vm0, %v257_v53, 0.0  ;;  %v279_v57 = vmul.f32 %v257_v53, %v257_v53  ;;  %v287_v5 = vsel %vm79_vm0, %v281_v61, 0.0 }
 0x1aa   :  { %v263_v58 = vadd.f32 %v262_v56, %v261_v55 }
 0x1ab   :  { %v283_v62 = vsel %vm79_vm0, %v279_v57, 0.0 }
 0x1ac   :  { %v265_v63 = vadd.f32 %v264_v59, %v263_v58  ;;  %v284_v0 = vadd.f32 %v283_v62, %v282_v60 }
 0x1ae   :  { %v267_v3 = vadd.f32 %v266_v2, %v265_v63  ;;  %v286_v4 = vadd.f32 %v285_v1, %v284_v0 }
 0x1b0   :  { %v268_v6 = vrot.slane %v267_v3, 4  ;;  %v288_v7 = vadd.f32 %v287_v5, %v286_v4 }
 0x1b2   :  { %v269_v8 = vadd.f32 %v268_v6, %v267_v3  ;;  %v289_v9 = vrot.slane %v288_v7, 4 }
 0x1b4   :  { %v270_v10 = vrot.slane %v269_v8, 2  ;;  %v290_v11 = vadd.f32 %v289_v9, %v288_v7 }
 0x1b6   :  { %v271_v12 = vadd.f32 %v270_v10, %v269_v8  ;;  %v291_v13 = vrot.slane %v290_v11, 2 }
 0x1b8   :  { %v272_v14 = vrot.slane %v271_v12, 1  ;;  %v292_v15 = vadd.f32 %v291_v13, %v290_v11 }
 0x1ba   :  { %v273_v17 = vadd.f32 %v272_v14, %v271_v12  ;;  %v293_v18 = vrot.slane %v292_v15, 1 }
 0x1bc   :  { %v274_v20 = vadd.f32 %v273_v17, %v260_v16  ;;  %v294_v21 = vadd.f32 %v293_v18, %v292_v15 }
 0x1be   :  { %276 = vst.msk [vmem:[%s456_s5] sm:$0x1] %vm275_vm2, %v274_v20  ;;  %v295_v22 = vadd.f32 %v294_v21, %v277_v19 }
 0x1c0   :  { %296 = vst.msk [vmem:[%s456_s5 + $0x1] sm:$0x1] %vm275_vm2, %v295_v22 }

</bundles_post_ra>
